<compile_context>
chip_gen: v5e
topology: v5e:2x2
jax: 0.10.0
libtpu: 0.0.40
codegen_flags: <defaults>
</compile_context>

<pallas_src>
import jax
import jax.numpy as jnp
from jax.experimental import pallas as pl
from jax.experimental.pallas import tpu as pltpu


def _spectral_mix_kernel(lr_ref, li_ref, wr_ref, wi_ref, or_ref, oi_ref):
    # Block shapes for this grid step (mode block of TM modes, modes on lanes):
    #   lr/li : (B, C_in, TM)   wr/wi : (C_in, C_out, TM)   or/oi : (B, C_out, TM)
    B, c_in, tm = lr_ref.shape
    c_out = wr_ref.shape[1]

    acc_r = jnp.zeros((B, c_out, tm), jnp.float32)
    acc_i = jnp.zeros((B, c_out, tm), jnp.float32)

    # Contraction over C_in on the VPU: out[b,o,m] = sum_i l[b,i,m] * w[i,o,m]
    # (complex). Static Python loop -> unrolled at trace time (C_in is small).
    for i in range(c_in):
        lr = lr_ref[:, i:i + 1, :]      # (B, 1, TM)   sublane-broadcasts to C_out
        li = li_ref[:, i:i + 1, :]
        wr = wr_ref[i:i + 1, :, :]      # (1, C_out, TM) leading-dim broadcasts to B
        wi = wi_ref[i:i + 1, :, :]
        acc_r = acc_r + lr * wr - li * wi
        acc_i = acc_i + lr * wi + li * wr

    # Lane-dense (TM multiple of 128) unmasked stores.
    or_ref[...] = acc_r
    oi_ref[...] = acc_i


def spectral_mix(lhs_r, lhs_i, w_r, w_i, block_m=512):
    """Complex per-mode channel mixing.

    lhs_* : (B, C_in, Mp) f32, w_* : (C_in, C_out, Mp) f32, Mp % 128 == 0.
    Returns (out_r, out_i), each (B, C_out, Mp) f32.
    """
    B, c_in, mp = lhs_r.shape
    c_out = w_r.shape[1]
    assert mp % 128 == 0, "mode axis must be padded to a multiple of 128"

    tm = min(block_m, mp)
    while mp % tm != 0:                 # keep block an exact divisor (still %128==0)
        tm -= 128
    grid = (mp // tm,)

    lhs_spec = pl.BlockSpec((B, c_in, tm), lambda m: (0, 0, m))
    w_spec = pl.BlockSpec((c_in, c_out, tm), lambda m: (0, 0, m))
    out_spec = pl.BlockSpec((B, c_out, tm), lambda m: (0, 0, m))
    out_shape = jax.ShapeDtypeStruct((B, c_out, mp), jnp.float32)

    return pl.pallas_call(
        _spectral_mix_kernel,
        grid=grid,
        in_specs=[lhs_spec, lhs_spec, w_spec, w_spec],
        out_specs=(out_spec, out_spec),
        out_shape=(out_shape, out_shape),
        compiler_params=pltpu.CompilerParams(
            # Mode blocks are independent -> megacore-shardable on v7x.
            dimension_semantics=("parallel",)),
    )(lhs_r, lhs_i, w_r, w_i)


def spectral_conv1d(x, w_r, w_i, n_modes):
    """Forward pass of SpectralConv1d.

    x   : (B, C_in, N) float32
    w_r : (C_in, C_out, n_modes) float32   (real part of complex weights)
    w_i : (C_in, C_out, n_modes) float32   (imag part)
    returns (B, C_out, N) float32
    """
    B, c_in, N = x.shape
    c_out = w_r.shape[1]
    n_freq = N // 2 + 1
    # Pad the frequency axis up to a multiple of 128 (lane-dense). Weights are
    # zero for modes >= n_modes, which reproduces the reference's zero-filled
    # untouched frequencies, so no scatter is needed afterwards.
    mp = ((n_freq + 127) // 128) * 128

    # TODO(synk): rfft/irfft have no Pallas TPU equivalent; they stay in plain JAX.
    xf = jnp.fft.rfft(x, axis=-1)                                  # (B, C_in, n_freq) c64

    lhs_r = jnp.zeros((B, c_in, mp), jnp.float32)
    lhs_r = lhs_r.at[:, :, :n_freq].set(jnp.real(xf).astype(jnp.float32))
    lhs_i = jnp.zeros((B, c_in, mp), jnp.float32)
    lhs_i = lhs_i.at[:, :, :n_freq].set(jnp.imag(xf).astype(jnp.float32))

    wr = jnp.zeros((c_in, c_out, mp), jnp.float32)
    wr = wr.at[:, :, :n_modes].set(w_r.astype(jnp.float32))
    wi = jnp.zeros((c_in, c_out, mp), jnp.float32)
    wi = wi.at[:, :, :n_modes].set(w_i.astype(jnp.float32))

    res_r, res_i = spectral_mix(lhs_r, lhs_i, wr, wi)              # (B, C_out, Mp)

    res = (res_r[:, :, :n_freq] + 1j * res_i[:, :, :n_freq]).astype(jnp.complex64)
    return jnp.fft.irfft(res, n=N, axis=-1).astype(jnp.float32)    # (B, C_out, N)


if __name__ == "__main__":
    # Small shapes consistent with the module.
    B, C_IN, C_OUT, N, N_MODES = 2, 4, 4, 16, 5

    key = jax.random.PRNGKey(0)
    kx, kwr, kwi = jax.random.split(key, 3)

    # Deterministic parameter init mirroring: scale * torch.rand(cfloat)
    scale = 1.0 / (C_IN * C_OUT)
    w_r = scale * jax.random.uniform(kwr, (C_IN, C_OUT, N_MODES), dtype=jnp.float32)
    w_i = scale * jax.random.uniform(kwi, (C_IN, C_OUT, N_MODES), dtype=jnp.float32)

    x = jax.random.normal(kx, (B, C_IN, N), dtype=jnp.float32)

    out = spectral_conv1d(x, w_r, w_i, N_MODES)
    out = jax.block_until_ready(out)

    # Pure-JAX reference check of the full forward pass.
    w_c = (w_r + 1j * w_i).astype(jnp.complex64)
    xf = jnp.fft.rfft(x, axis=-1)
    ref_modes = jnp.einsum('bix,iox->box', xf[:, :, :N_MODES], w_c)
    ref = jnp.zeros((B, C_OUT, N // 2 + 1), dtype=jnp.complex64)
    ref = ref.at[:, :, :N_MODES].set(ref_modes)
    ref = jnp.fft.irfft(ref, n=N, axis=-1)

    assert out.shape == (B, C_OUT, N)
    assert jnp.allclose(out, ref, atol=1e-5, rtol=1e-5)
    print("KERNEL_OK")
</pallas_src>

<mosaic_0001>
module attributes {stable_mosaic.version = 11 : i64} {
  func.func @_spectral_mix_kernel(%arg0: i32, %arg1: memref<2x4x128xf32, #tpu.memory_space<vmem>>, %arg2: memref<2x4x128xf32, #tpu.memory_space<vmem>>, %arg3: memref<4x4x128xf32, #tpu.memory_space<vmem>>, %arg4: memref<4x4x128xf32, #tpu.memory_space<vmem>>, %arg5: memref<2x4x128xf32, #tpu.memory_space<vmem>>, %arg6: memref<2x4x128xf32, #tpu.memory_space<vmem>>) attributes {dimension_semantics = [#tpu.dimension_semantics<parallel>], iteration_bounds = array<i64: 1>, scalar_prefetch = 0 : i64, scratch_operands = 0 : i64, tpu.core_type = #tpu.core_type<tc>, window_params = [{transform_indices = @transform_0, window_bounds = array<i64: 2, 4, 128>}, {transform_indices = @transform_1, window_bounds = array<i64: 2, 4, 128>}, {transform_indices = @transform_2, window_bounds = array<i64: 4, 4, 128>}, {transform_indices = @transform_3, window_bounds = array<i64: 4, 4, 128>}, {transform_indices = @transform_4, window_bounds = array<i64: 2, 4, 128>}, {transform_indices = @transform_5, window_bounds = array<i64: 2, 4, 128>}]} {
    %cst = arith.constant 0.000000e+00 : f32
    %0 = vector.broadcast %cst : f32 to vector<2x4x128xf32>
    %cst_0 = arith.constant 0.000000e+00 : f32
    %1 = vector.broadcast %cst_0 : f32 to vector<2x4x128xf32>
    %c0 = arith.constant 0 : index
    %c0_1 = arith.constant 0 : index
    %c0_2 = arith.constant 0 : index
    %2 = vector.load %arg1[%c0, %c0_1, %c0_2] : memref<2x4x128xf32, #tpu.memory_space<vmem>>, vector<2x1x128xf32>
    %c0_3 = arith.constant 0 : index
    %c0_4 = arith.constant 0 : index
    %c0_5 = arith.constant 0 : index
    %3 = vector.load %arg2[%c0_3, %c0_4, %c0_5] : memref<2x4x128xf32, #tpu.memory_space<vmem>>, vector<2x1x128xf32>
    %c0_6 = arith.constant 0 : index
    %c0_7 = arith.constant 0 : index
    %c0_8 = arith.constant 0 : index
    %4 = vector.load %arg3[%c0_6, %c0_7, %c0_8] : memref<4x4x128xf32, #tpu.memory_space<vmem>>, vector<1x4x128xf32>
    %c0_9 = arith.constant 0 : index
    %c0_10 = arith.constant 0 : index
    %c0_11 = arith.constant 0 : index
    %5 = vector.load %arg4[%c0_9, %c0_10, %c0_11] : memref<4x4x128xf32, #tpu.memory_space<vmem>>, vector<1x4x128xf32>
    %6 = vector.broadcast %2 : vector<2x1x128xf32> to vector<2x4x128xf32>
    %7 = vector.broadcast %4 : vector<1x4x128xf32> to vector<2x4x128xf32>
    %8 = arith.mulf %6, %7 : vector<2x4x128xf32>
    %9 = arith.addf %0, %8 : vector<2x4x128xf32>
    %10 = vector.broadcast %3 : vector<2x1x128xf32> to vector<2x4x128xf32>
    %11 = vector.broadcast %5 : vector<1x4x128xf32> to vector<2x4x128xf32>
    %12 = arith.mulf %10, %11 : vector<2x4x128xf32>
    %13 = arith.subf %9, %12 : vector<2x4x128xf32>
    %14 = vector.broadcast %2 : vector<2x1x128xf32> to vector<2x4x128xf32>
    %15 = vector.broadcast %5 : vector<1x4x128xf32> to vector<2x4x128xf32>
    %16 = arith.mulf %14, %15 : vector<2x4x128xf32>
    %17 = arith.addf %1, %16 : vector<2x4x128xf32>
    %18 = vector.broadcast %3 : vector<2x1x128xf32> to vector<2x4x128xf32>
    %19 = vector.broadcast %4 : vector<1x4x128xf32> to vector<2x4x128xf32>
    %20 = arith.mulf %18, %19 : vector<2x4x128xf32>
    %21 = arith.addf %17, %20 : vector<2x4x128xf32>
    %c0_12 = arith.constant 0 : index
    %c1 = arith.constant 1 : index
    %c0_13 = arith.constant 0 : index
    %22 = vector.load %arg1[%c0_12, %c1, %c0_13] : memref<2x4x128xf32, #tpu.memory_space<vmem>>, vector<2x1x128xf32>
    %c0_14 = arith.constant 0 : index
    %c1_15 = arith.constant 1 : index
    %c0_16 = arith.constant 0 : index
    %23 = vector.load %arg2[%c0_14, %c1_15, %c0_16] : memref<2x4x128xf32, #tpu.memory_space<vmem>>, vector<2x1x128xf32>
    %c1_17 = arith.constant 1 : index
    %c0_18 = arith.constant 0 : index
    %c0_19 = arith.constant 0 : index
    %24 = vector.load %arg3[%c1_17, %c0_18, %c0_19] : memref<4x4x128xf32, #tpu.memory_space<vmem>>, vector<1x4x128xf32>
    %c1_20 = arith.constant 1 : index
    %c0_21 = arith.constant 0 : index
    %c0_22 = arith.constant 0 : index
    %25 = vector.load %arg4[%c1_20, %c0_21, %c0_22] : memref<4x4x128xf32, #tpu.memory_space<vmem>>, vector<1x4x128xf32>
    %26 = vector.broadcast %22 : vector<2x1x128xf32> to vector<2x4x128xf32>
    %27 = vector.broadcast %24 : vector<1x4x128xf32> to vector<2x4x128xf32>
    %28 = arith.mulf %26, %27 : vector<2x4x128xf32>
    %29 = arith.addf %13, %28 : vector<2x4x128xf32>
    %30 = vector.broadcast %23 : vector<2x1x128xf32> to vector<2x4x128xf32>
    %31 = vector.broadcast %25 : vector<1x4x128xf32> to vector<2x4x128xf32>
    %32 = arith.mulf %30, %31 : vector<2x4x128xf32>
    %33 = arith.subf %29, %32 : vector<2x4x128xf32>
    %34 = vector.broadcast %22 : vector<2x1x128xf32> to vector<2x4x128xf32>
    %35 = vector.broadcast %25 : vector<1x4x128xf32> to vector<2x4x128xf32>
    %36 = arith.mulf %34, %35 : vector<2x4x128xf32>
    %37 = arith.addf %21, %36 : vector<2x4x128xf32>
    %38 = vector.broadcast %23 : vector<2x1x128xf32> to vector<2x4x128xf32>
    %39 = vector.broadcast %24 : vector<1x4x128xf32> to vector<2x4x128xf32>
    %40 = arith.mulf %38, %39 : vector<2x4x128xf32>
    %41 = arith.addf %37, %40 : vector<2x4x128xf32>
    %c0_23 = arith.constant 0 : index
    %c2 = arith.constant 2 : index
    %c0_24 = arith.constant 0 : index
    %42 = vector.load %arg1[%c0_23, %c2, %c0_24] : memref<2x4x128xf32, #tpu.memory_space<vmem>>, vector<2x1x128xf32>
    %c0_25 = arith.constant 0 : index
    %c2_26 = arith.constant 2 : index
    %c0_27 = arith.constant 0 : index
    %43 = vector.load %arg2[%c0_25, %c2_26, %c0_27] : memref<2x4x128xf32, #tpu.memory_space<vmem>>, vector<2x1x128xf32>
    %c2_28 = arith.constant 2 : index
    %c0_29 = arith.constant 0 : index
    %c0_30 = arith.constant 0 : index
    %44 = vector.load %arg3[%c2_28, %c0_29, %c0_30] : memref<4x4x128xf32, #tpu.memory_space<vmem>>, vector<1x4x128xf32>
    %c2_31 = arith.constant 2 : index
    %c0_32 = arith.constant 0 : index
    %c0_33 = arith.constant 0 : index
    %45 = vector.load %arg4[%c2_31, %c0_32, %c0_33] : memref<4x4x128xf32, #tpu.memory_space<vmem>>, vector<1x4x128xf32>
    %46 = vector.broadcast %42 : vector<2x1x128xf32> to vector<2x4x128xf32>
    %47 = vector.broadcast %44 : vector<1x4x128xf32> to vector<2x4x128xf32>
    %48 = arith.mulf %46, %47 : vector<2x4x128xf32>
    %49 = arith.addf %33, %48 : vector<2x4x128xf32>
    %50 = vector.broadcast %43 : vector<2x1x128xf32> to vector<2x4x128xf32>
    %51 = vector.broadcast %45 : vector<1x4x128xf32> to vector<2x4x128xf32>
    %52 = arith.mulf %50, %51 : vector<2x4x128xf32>
    %53 = arith.subf %49, %52 : vector<2x4x128xf32>
    %54 = vector.broadcast %42 : vector<2x1x128xf32> to vector<2x4x128xf32>
    %55 = vector.broadcast %45 : vector<1x4x128xf32> to vector<2x4x128xf32>
    %56 = arith.mulf %54, %55 : vector<2x4x128xf32>
    %57 = arith.addf %41, %56 : vector<2x4x128xf32>
    %58 = vector.broadcast %43 : vector<2x1x128xf32> to vector<2x4x128xf32>
    %59 = vector.broadcast %44 : vector<1x4x128xf32> to vector<2x4x128xf32>
    %60 = arith.mulf %58, %59 : vector<2x4x128xf32>
    %61 = arith.addf %57, %60 : vector<2x4x128xf32>
    %c0_34 = arith.constant 0 : index
    %c3 = arith.constant 3 : index
    %c0_35 = arith.constant 0 : index
    %62 = vector.load %arg1[%c0_34, %c3, %c0_35] : memref<2x4x128xf32, #tpu.memory_space<vmem>>, vector<2x1x128xf32>
    %c0_36 = arith.constant 0 : index
    %c3_37 = arith.constant 3 : index
    %c0_38 = arith.constant 0 : index
    %63 = vector.load %arg2[%c0_36, %c3_37, %c0_38] : memref<2x4x128xf32, #tpu.memory_space<vmem>>, vector<2x1x128xf32>
    %c3_39 = arith.constant 3 : index
    %c0_40 = arith.constant 0 : index
    %c0_41 = arith.constant 0 : index
    %64 = vector.load %arg3[%c3_39, %c0_40, %c0_41] : memref<4x4x128xf32, #tpu.memory_space<vmem>>, vector<1x4x128xf32>
    %c3_42 = arith.constant 3 : index
    %c0_43 = arith.constant 0 : index
    %c0_44 = arith.constant 0 : index
    %65 = vector.load %arg4[%c3_42, %c0_43, %c0_44] : memref<4x4x128xf32, #tpu.memory_space<vmem>>, vector<1x4x128xf32>
    %66 = vector.broadcast %62 : vector<2x1x128xf32> to vector<2x4x128xf32>
    %67 = vector.broadcast %64 : vector<1x4x128xf32> to vector<2x4x128xf32>
    %68 = arith.mulf %66, %67 : vector<2x4x128xf32>
    %69 = arith.addf %53, %68 : vector<2x4x128xf32>
    %70 = vector.broadcast %63 : vector<2x1x128xf32> to vector<2x4x128xf32>
    %71 = vector.broadcast %65 : vector<1x4x128xf32> to vector<2x4x128xf32>
    %72 = arith.mulf %70, %71 : vector<2x4x128xf32>
    %73 = arith.subf %69, %72 : vector<2x4x128xf32>
    %74 = vector.broadcast %62 : vector<2x1x128xf32> to vector<2x4x128xf32>
    %75 = vector.broadcast %65 : vector<1x4x128xf32> to vector<2x4x128xf32>
    %76 = arith.mulf %74, %75 : vector<2x4x128xf32>
    %77 = arith.addf %61, %76 : vector<2x4x128xf32>
    %78 = vector.broadcast %63 : vector<2x1x128xf32> to vector<2x4x128xf32>
    %79 = vector.broadcast %64 : vector<1x4x128xf32> to vector<2x4x128xf32>
    %80 = arith.mulf %78, %79 : vector<2x4x128xf32>
    %81 = arith.addf %77, %80 : vector<2x4x128xf32>
    %c0_45 = arith.constant 0 : index
    %c0_46 = arith.constant 0 : index
    %c0_47 = arith.constant 0 : index
    %82 = vector.load %arg5[%c0_45, %c0_46, %c0_47] : memref<2x4x128xf32, #tpu.memory_space<vmem>>, vector<2x4x128xf32>
    tpu.vector_store %arg5[%c0_45, %c0_46, %c0_47], %73 {strides = array<i32>} : memref<2x4x128xf32, #tpu.memory_space<vmem>>, vector<2x4x128xf32>,
    %c0_48 = arith.constant 0 : index
    %c0_49 = arith.constant 0 : index
    %c0_50 = arith.constant 0 : index
    %83 = vector.load %arg6[%c0_48, %c0_49, %c0_50] : memref<2x4x128xf32, #tpu.memory_space<vmem>>, vector<2x4x128xf32>
    tpu.vector_store %arg6[%c0_48, %c0_49, %c0_50], %81 {strides = array<i32>} : memref<2x4x128xf32, #tpu.memory_space<vmem>>, vector<2x4x128xf32>,
    return
  }
  func.func @transform_0(%arg0: i32) -> (i32, i32, i32) {
    %c0_i32 = arith.constant 0 : i32
    %c0_i32_0 = arith.constant 0 : i32
    %c0_i32_1 = arith.constant 0 : i32
    return %c0_i32, %c0_i32_0, %arg0 : i32, i32, i32
  }
  func.func @transform_1(%arg0: i32) -> (i32, i32, i32) {
    %c0_i32 = arith.constant 0 : i32
    %c0_i32_0 = arith.constant 0 : i32
    %c0_i32_1 = arith.constant 0 : i32
    return %c0_i32, %c0_i32_0, %arg0 : i32, i32, i32
  }
  func.func @transform_2(%arg0: i32) -> (i32, i32, i32) {
    %c0_i32 = arith.constant 0 : i32
    %c0_i32_0 = arith.constant 0 : i32
    %c0_i32_1 = arith.constant 0 : i32
    return %c0_i32, %c0_i32_0, %arg0 : i32, i32, i32
  }
  func.func @transform_3(%arg0: i32) -> (i32, i32, i32) {
    %c0_i32 = arith.constant 0 : i32
    %c0_i32_0 = arith.constant 0 : i32
    %c0_i32_1 = arith.constant 0 : i32
    return %c0_i32, %c0_i32_0, %arg0 : i32, i32, i32
  }
  func.func @transform_4(%arg0: i32) -> (i32, i32, i32) {
    %c0_i32 = arith.constant 0 : i32
    %c0_i32_0 = arith.constant 0 : i32
    %c0_i32_1 = arith.constant 0 : i32
    return %c0_i32, %c0_i32_0, %arg0 : i32, i32, i32
  }
  func.func @transform_5(%arg0: i32) -> (i32, i32, i32) {
    %c0_i32 = arith.constant 0 : i32
    %c0_i32_0 = arith.constant 0 : i32
    %c0_i32_1 = arith.constant 0 : i32
    return %c0_i32, %c0_i32_0, %arg0 : i32, i32, i32
  }
}

</mosaic_0001>

<bundles_post_ra>
// kernel: tpu_custom_call.1
= control target key start
LH: loop header
LB: loop body
LE: loop exit
PB: predicated region body
PF: predicated region fallthrough
CT: control target
= control target key end

     0   :  { %11 = vsyncpa [#allocation3], 0  ;;  %s489_s0 = inlined_call_operand.hbm [shape: f32[2,4,128], index: 0, kind: input, shape index: {}]   ;;  %s490_s1 = inlined_call_operand.hbm [shape: f32[2,4,128], index: 1, kind: input, shape index: {}]   ;;  %s491_s2 = inlined_call_operand.hbm [shape: f32[4,4,128], index: 2, kind: input, shape index: {}]   ;;  %s492_s3 = inlined_call_operand.hbm [shape: f32[4,4,128], index: 3, kind: input, shape index: {}]   ;;  %s493_s4 = inlined_call_operand.hbm [shape: f32[2,4,128], index: 4, kind: output, shape index: {0}]   ;;  %s494_s5 = inlined_call_operand.hbm [shape: f32[2,4,128], index: 5, kind: output, shape index: {1}]  }
   0x1   :  { %12 = vsyncpa [#allocation6], 0 }
   0x2   :  { %13 = vsyncpa [#allocation9], 0 }
   0x3   :  { %14 = vsyncpa [#allocation4], 0 }
   0x4   :  { %15 = vsyncpa [#allocation12], 0  ;;  %s33_s20 = sshll.u32 %s490_s1, 4  ;;  %s415_s21 = smov [#allocation5]   ;;  %s34_s20 = int_to_ptr.hbm [resolvable:$true] %s33_s20 }
   0x5   :  { %s35_s22 = sshll.u32 %s415_s21, 4  ;;  %s20_s25 = sshll.u32 %s489_s0, 4  ;;  %s36_s22 = int_to_ptr.vmem [resolvable:$true] %s35_s22  ;;  %s21_s25 = int_to_ptr.hbm [resolvable:$true] %s20_s25 }
   0x6   :  { %s416_s26 = smov 64   ;;  %s417_s27 = smov 4  }
   0x7   :  { %41 = dma.hbm_to_vmem [thread:$0]  %s34_s20, 128, %s36_s22, [#allocation6], %s416_s26, %s416_s26, %s417_s27  }
   0x8   :  { %s418_s28 = smov [#allocation2]   ;;  %s46_s1 = sshll.u32 %s491_s2, 4  ;;  %s47_s1 = int_to_ptr.hbm [resolvable:$true] %s46_s1 }
   0x9   :  { %s22_s29 = sshll.u32 %s418_s28, 4  ;;  %s59_s8 = sshll.u32 %s492_s3, 4  ;;  %s23_s29 = int_to_ptr.vmem [resolvable:$true] %s22_s29  ;;  %s60_s8 = int_to_ptr.hbm [resolvable:$true] %s59_s8 }
   0xa   :  { %28 = dma.hbm_to_vmem [thread:$0]  %s21_s25, 128, %s23_s29, [#allocation3], %s416_s26, %s416_s26, %s417_s27  }
   0xb   :  { %s419_s9 = smov [#allocation7]   ;;  %s420_s11 = smov [#allocation8]  }
   0xc   :  { %s48_s10 = sshll.u32 %s419_s9, 4  ;;  %s61_s2 = sshll.u32 %s420_s11, 4  ;;  %s49_s10 = int_to_ptr.vmem [resolvable:$true] %s48_s10  ;;  %s62_s2 = int_to_ptr.vmem [resolvable:$true] %s61_s2 }
   0xd   :  { %54 = dma.hbm_to_vmem [thread:$0]  %s47_s1, 256, %s49_s10, [#allocation6], %s416_s26, %s416_s26, %s417_s27  }
   0xe   :  { %67 = dma.hbm_to_vmem [thread:$0]  %s60_s8, 256, %s62_s2, [#allocation9], %s416_s26, %s416_s26, %s417_s27  }
   0xf   :  { %405 = dma.done.wait [#allocation3], 128  }
  0x10   :  { %406 = vsyncadd [#allocation3], 4294967168 }
  0x11   :  { %407 = dma.done.wait [#allocation6], 384  }
  0x12   :  { %408 = vsyncadd [#allocation6], 4294966912 }
  0x13   :  { %409 = dma.done.wait [#allocation9], 256  }
  0x14   :  { %410 = vsyncadd [#allocation9], 4294967040  ;;  %v88_v0 = vld [vmem:[#allocation7] sm:$0xf]  ;;  %v89_v1 = vld [vmem:[#allocation8] sm:$0xf] }
  0x15   :  { %v245_v2 = vld [vmem:[#allocation2] ss:$0 sm:$0xff]  ;;  %v246_v3 = vld [vmem:[#allocation5] ss:$0 sm:$0xff]  ;;  %v115_v4 = vld [vmem:[#allocation7 + $0x4] sm:$0xf] }
  0x16   :  { %v92_v5 = vmul.f32 %v245_v2, %v88_v0  ;;  %v98_v6 = vmul.f32 %v246_v3, %v89_v1  ;;  %v117_v7 = vld [vmem:[#allocation8 + $0x4] sm:$0xf]  ;;  %v247_v8 = vld [vmem:[#allocation2 + $0x1] ss:$0 sm:$0xff]  ;;  %v248_v9 = vld [vmem:[#allocation5 + $0x1] ss:$0 sm:$0xff]  ;;  %v102_v10 = vmul.f32 %v245_v2, %v89_v1  ;;  %v106_v11 = vmul.f32 %v246_v3, %v88_v0 }
  0x17   :  { %v143_v12 = vld [vmem:[#allocation7 + $0x8] sm:$0xf]  ;;  %v120_v14 = vmul.f32 %v247_v8, %v115_v4  ;;  %v126_v15 = vmul.f32 %v248_v9, %v117_v7  ;;  %v145_v16 = vld [vmem:[#allocation8 + $0x8] sm:$0xf]  ;;  %v249_v17 = vld [vmem:[#allocation2 + $0x2] ss:$0 sm:$0xff]  ;;  %v130_v21 = vmul.f32 %v247_v8, %v117_v7  ;;  %v134_v22 = vmul.f32 %v248_v9, %v115_v4 }
  0x18   :  { %v100_v13 = vsub.f32 %v92_v5, %v98_v6  ;;  %v250_v18 = vld [vmem:[#allocation5 + $0x2] ss:$0 sm:$0xff]  ;;  %v108_v19 = vadd.f32 %v106_v11, %v102_v10  ;;  %v171_v20 = vld [vmem:[#allocation7 + $0xc] sm:$0xf]  ;;  %v148_v24 = vmul.f32 %v249_v17, %v143_v12  ;;  %v173_v25 = vld [vmem:[#allocation8 + $0xc] sm:$0xf]  ;;  %v158_v30 = vmul.f32 %v249_v17, %v145_v16 }
  0x19   :  { %v251_v26 = vld [vmem:[#allocation2 + $0x3] ss:$0 sm:$0xff]  ;;  %v252_v27 = vld [vmem:[#allocation5 + $0x3] ss:$0 sm:$0xff]  ;;  %v253_v28 = vld [vmem:[#allocation2 + $0x4] ss:$0 sm:$0xff]  ;;  %v154_v32 = vmul.f32 %v250_v18, %v145_v16  ;;  %v162_v38 = vmul.f32 %v250_v18, %v143_v12 }
  0x1a   :  { %v122_v23 = vadd.f32 %v120_v14, %v100_v13  ;;  %v132_v29 = vadd.f32 %v130_v21, %v108_v19  ;;  %v254_v33 = vld [vmem:[#allocation5 + $0x4] ss:$0 sm:$0xff]  ;;  %v93_v34 = vmul.f32 %v253_v28, %v88_v0  ;;  %v255_v35 = vld [vmem:[#allocation2 + $0x5] ss:$0 sm:$0xff]  ;;  %v256_v36 = vld [vmem:[#allocation5 + $0x5] ss:$0 sm:$0xff]  ;;  %v103_v39 = vmul.f32 %v253_v28, %v89_v1 }
  0x1b   :  { %v176_v41 = vmul.f32 %v251_v26, %v171_v20  ;;  %v99_v42 = vmul.f32 %v254_v33, %v89_v1  ;;  %v257_v43 = vld [vmem:[#allocation2 + $0x6] ss:$0 sm:$0xff]  ;;  %v107_v44 = vmul.f32 %v254_v33, %v88_v0  ;;  %v121_v45 = vmul.f32 %v255_v35, %v115_v4  ;;  %v258_v53 = vld [vmem:[#allocation5 + $0x6] ss:$0 sm:$0xff]  ;;  %v259_v61 = vld [vmem:[#allocation2 + $0x7] ss:$0 sm:$0xff] }
  0x1c   :  { %v128_v31 = vsub.f32 %v122_v23, %v126_v15  ;;  %v136_v37 = vadd.f32 %v134_v22, %v132_v29  ;;  %v186_v47 = vmul.f32 %v251_v26, %v173_v25  ;;  %v131_v48 = vmul.f32 %v255_v35, %v117_v7  ;;  %v260_v5 = vld [vmem:[#allocation5 + $0x7] ss:$0 sm:$0xff]  ;;  %s421_s3 = smov [#allocation10]   ;;  %s204_s15 = sshll.u32 %s493_s4, 4  ;;  %s205_s15 = int_to_ptr.hbm [resolvable:$true] %s204_s15 }
  0x1d   :  { %v182_v50 = vmul.f32 %v252_v27, %v173_v25  ;;  %v101_v51 = vsub.f32 %v93_v34, %v99_v42  ;;  %v127_v52 = vmul.f32 %v256_v36, %v117_v7  ;;  %v190_v55 = vmul.f32 %v252_v27, %v171_v20  ;;  %s202_s12 = sshll.u32 %s421_s3, 4  ;;  %s422_s16 = smov [#allocation11]   ;;  %s203_s12 = int_to_ptr.vmem [resolvable:$true] %s202_s12 }
  0x1e   :  { %v150_v40 = vadd.f32 %v148_v24, %v128_v31  ;;  %v160_v46 = vadd.f32 %v158_v30, %v136_v37  ;;  %v109_v56 = vadd.f32 %v107_v44, %v103_v39  ;;  %v135_v57 = vmul.f32 %v256_v36, %v115_v4  ;;  %s215_s17 = sshll.u32 %s422_s16, 4  ;;  %s217_s20 = sshll.u32 %s494_s5, 4  ;;  %s216_s17 = int_to_ptr.vmem [resolvable:$true] %s215_s17  ;;  %s218_s20 = int_to_ptr.hbm [resolvable:$true] %s217_s20 }
  0x1f   :  { %v123_v59 = vadd.f32 %v121_v45, %v101_v51  ;;  %v149_v60 = vmul.f32 %v257_v43, %v143_v12  ;;  %v159_v0 = vmul.f32 %v257_v43, %v145_v16  ;;  %v155_v3 = vmul.f32 %v258_v53, %v145_v16 }
  0x20   :  { %v156_v49 = vsub.f32 %v150_v40, %v154_v32  ;;  %v164_v54 = vadd.f32 %v162_v38, %v160_v46  ;;  %v133_v63 = vadd.f32 %v131_v48, %v109_v56  ;;  %v163_v9 = vmul.f32 %v258_v53, %v143_v12 }
  0x21   :  { %v129_v2 = vsub.f32 %v123_v59, %v127_v52  ;;  %v177_v10 = vmul.f32 %v259_v61, %v171_v20  ;;  %v187_v4 = vmul.f32 %v259_v61, %v173_v25  ;;  %v183_v14 = vmul.f32 %v260_v5, %v173_v25 }
  0x22   :  { %v178_v58 = vadd.f32 %v176_v41, %v156_v49  ;;  %v188_v62 = vadd.f32 %v186_v47, %v164_v54  ;;  %v137_v8 = vadd.f32 %v135_v57, %v133_v63  ;;  %v191_v17 = vmul.f32 %v260_v5, %v171_v20 }
  0x23   :  { %v151_v7 = vadd.f32 %v149_v60, %v129_v2 }
  0x24   :  { %v184_v1 = vsub.f32 %v178_v58, %v182_v50  ;;  %v192_v6 = vadd.f32 %v190_v55, %v188_v62  ;;  %v161_v11 = vadd.f32 %v159_v0, %v137_v8 }
  0x25   :  { %v157_v13 = vsub.f32 %v151_v7, %v155_v3 }
  0x26   :  { %194 = vst [vmem:[#allocation10] sm:$0xf] %v184_v1  ;;  %v165_v15 = vadd.f32 %v163_v9, %v161_v11 }
  0x27   :  { %196 = vst [vmem:[#allocation11] sm:$0xf] %v192_v6  ;;  %v179_v16 = vadd.f32 %v177_v10, %v157_v13 }
  0x28   :  { %v189_v12 = vadd.f32 %v187_v4, %v165_v15 }
  0x29   :  { %v185_v18 = vsub.f32 %v179_v16, %v183_v14 }
  0x2a   :  { %v193_v19 = vadd.f32 %v191_v17, %v189_v12 }
  0x2b   :  { %195 = vst [vmem:[#allocation10 + $0x4] sm:$0xf] %v185_v18 }
  0x2c   :  { %197 = vst [vmem:[#allocation11 + $0x4] sm:$0xf] %v193_v19  ;;  %210 = dma.vmem_to_hbm [thread:$0]  %s203_s12, 128, %s205_s15, [#allocation4], %s416_s26, %s416_s26, %s417_s27  }
  0x2d   :  { %223 = dma.vmem_to_hbm [thread:$0]  %s216_s17, 128, %s218_s20, [#allocation12], %s416_s26, %s416_s26, %s417_s27  }
  0x2e   :  { %411 = dma.done.wait [#allocation4], 128  }
  0x2f   :  { %412 = vsyncadd [#allocation4], 4294967168 }
  0x30   :  { %413 = dma.done.wait [#allocation12], 128  }
  0x31   :  { %414 = vsyncadd [#allocation12], 4294967168 }
  0x32   :  { %232 = vsyncpa [#allocation3], 1 }
  0x33   :  { %233 = vsyncpa [#allocation6], 1 }
  0x34   :  { %234 = vsyncpa [#allocation9], 1 }
  0x35   :  { %235 = vsyncpa [#allocation4], 1 }
  0x36   :  { %236 = vsyncpa [#allocation12], 1 }

</bundles_post_ra>
